<compile_context>
chip_gen: v7x
topology: tpu7x:2x2x1
jax: 0.10.0
libtpu: 0.0.40
codegen_flags: <defaults>
</compile_context>

<pallas_src>
import functools

import jax
import jax.numpy as jnp
from jax import lax
from jax.experimental import pallas as pl
from jax.experimental.pallas import tpu as pltpu

_TARGET_BLOCK_BYTES = 2 * 1024 * 1024   # ~2 MiB per input block
_MAX_TILE_ROWS = 1024


def _cdiv(a, b):
    return -(-a // b)


def _round_up(a, b):
    return _cdiv(a, b) * b


def _sublane_quantum(*dtypes):
    """Row-tile granularity: 8 for 32-bit, 16 for bf16, 32 for 8-bit inputs."""
    q = 8
    for d in dtypes:
        q = max(q, 8 * max(1, 4 // jnp.dtype(d).itemsize))
    return q


def _row_tiling(n_rows, bytes_per_row, quantum):
    """Pick (tile_rows, n_tiles, n_cores): ~2 MiB input blocks, dual-TC split when even."""
    t = (_TARGET_BLOCK_BYTES // max(bytes_per_row, 1)) // quantum * quantum
    t = max(quantum, min(_MAX_TILE_ROWS, t))
    t = min(t, _round_up(n_rows, quantum))
    n_tiles = _cdiv(n_rows, t)
    n_cores = 2 if (n_tiles >= 2 and n_tiles % 2 == 0) else 1
    return t, n_tiles, n_cores


def _bce_logits(x, t):
    # Numerically-stable binary_cross_entropy_with_logits (elementwise):
    #   max(x, 0) - x*t + log1p(exp(-|x|))
    return jnp.maximum(x, 0.0) - x * t + jnp.log1p(jnp.exp(-jnp.abs(x)))


def _accumulate(acc_ref, loss):
    """Partial-reduce a (tile_rows, C) f32 loss tile into the (8, C) accumulator.

    Uses only static, sublane-aligned 2-D slices + adds (guaranteed cheap views), so the
    per-step accumulator read-modify-write touches 8 rows instead of the whole tile.
    """
    part = loss[0:8, :]
    for s in range(1, loss.shape[0] // 8):
        part = part + loss[s * 8:(s + 1) * 8, :]
    acc_ref[...] += part


def _accumulate_tile(acc_ref, loss, *, ragged, n_rows, tile_rows, core, step, n_steps):
    """Accumulate one loss tile; the ragged-tail mask only runs on the globally-last tile."""
    if not ragged:
        _accumulate(acc_ref, loss)
        return

    is_tail = jnp.logical_and(core == pl.num_programs(0) - 1, step == n_steps - 1)

    @pl.when(is_tail)
    def _():
        g = core * n_steps + step
        row = lax.broadcasted_iota(jnp.int32, loss.shape, 0) + g * tile_rows
        _accumulate(acc_ref, jnp.where(row < n_rows, loss, 0.0))

    @pl.when(jnp.logical_not(is_tail))
    def _():
        _accumulate(acc_ref, loss)


# --------------------------------------------------------------------------------------
# Dense-target path: x.shape == y.shape.
# --------------------------------------------------------------------------------------
def _bce_dense_kernel(x_ref, y_ref, out_ref, acc_ref, *,
                      n_rows, tile_rows, threshold, inv_count, ragged):
    c = pl.program_id(0)            # TensorCore split ("parallel")
    i = pl.program_id(1)            # row-tile reduction axis ("arbitrary")
    n_i = pl.num_programs(1)

    @pl.when(i == 0)
    def _():
        acc_ref[...] = jnp.zeros_like(acc_ref)

    x = x_ref[...].astype(jnp.float32)           # in-kernel cast (inputs may be bf16)
    t = y_ref[...].astype(jnp.float32)
    if threshold is not None:                    # timm: target = (target > threshold)
        t = (t > threshold).astype(jnp.float32)
    loss = _bce_logits(x, t)

    _accumulate_tile(acc_ref, loss, ragged=ragged, n_rows=n_rows,
                     tile_rows=tile_rows, core=c, step=i, n_steps=n_i)

    @pl.when(i == n_i - 1)
    def _():
        out_ref[...] = (jnp.sum(acc_ref[...]) * inv_count).reshape(1, 1)


# --------------------------------------------------------------------------------------
# Index-label path: x (N, C) logits, y (N,) class indices -> smoothed one-hot targets.
# --------------------------------------------------------------------------------------
def _bce_index_kernel(x_ref, y_ref, out_ref, acc_ref, *,
                      n_rows, n_classes, tile_rows, smoothing, threshold,
                      inv_count, ragged):
    c = pl.program_id(0)
    i = pl.program_id(1)
    n_i = pl.num_programs(1)

    @pl.when(i == 0)
    def _():
        acc_ref[...] = jnp.zeros_like(acc_ref)

    x = x_ref[...].astype(jnp.float32)           # (tile_rows, C)
    yv = y_ref[...]                              # (tile_rows, 1) int32 class index

    smooth = smoothing / n_classes
    on_val = 1.0 - smoothing + smooth
    if threshold is not None:                    # torch: y = (y > bce_target) after smoothing
        on_val = 1.0 if on_val > threshold else 0.0
        smooth = 1.0 if smooth > threshold else 0.0

    col = lax.broadcasted_iota(jnp.int32, x.shape, 1)
    t = jnp.where(col == yv, on_val, smooth).astype(jnp.float32)
    loss = _bce_logits(x, t)

    _accumulate_tile(acc_ref, loss, ragged=ragged, n_rows=n_rows,
                     tile_rows=tile_rows, core=c, step=i, n_steps=n_i)

    @pl.when(i == n_i - 1)
    def _():
        out_ref[...] = (jnp.sum(acc_ref[...]) * inv_count).reshape(1, 1)


# --------------------------------------------------------------------------------------
# Launchers.
# --------------------------------------------------------------------------------------
def _launch(kernel, x2, y2, n_cols, y_cols, tile_rows, n_tiles, n_cores):
    per_core = n_tiles // n_cores
    row_map = lambda ci, ii: (ci * per_core + ii, 0)
    out = pl.pallas_call(
        kernel,
        out_shape=jax.ShapeDtypeStruct((n_cores, 1), jnp.float32),
        grid=(n_cores, per_core),
        in_specs=[
            pl.BlockSpec((tile_rows, n_cols), row_map),
            pl.BlockSpec((tile_rows, y_cols), row_map),
        ],
        out_specs=pl.BlockSpec((1, 1), lambda ci, ii: (ci, 0)),
        scratch_shapes=[pltpu.VMEM((8, n_cols), jnp.float32)],
        compiler_params=pltpu.CompilerParams(
            dimension_semantics=("parallel", "arbitrary"),
            vmem_limit_bytes=32 * 1024 * 1024,
        ),
    )(x2, y2)
    return jnp.sum(out)            # reduce <= 2 per-core partial sums


def _bce_index(x, y, smoothing, bce_target):
    n, c = x.shape
    q = _sublane_quantum(x.dtype, jnp.int32)
    tile_rows, n_tiles, n_cores = _row_tiling(n, c * x.dtype.itemsize, q)
    yv = y.reshape(-1, 1).astype(jnp.int32)
    kernel = functools.partial(
        _bce_index_kernel, n_rows=n, n_classes=c, tile_rows=tile_rows,
        smoothing=smoothing, threshold=bce_target,
        inv_count=1.0 / float(n * c), ragged=(n % tile_rows != 0))
    return _launch(kernel, x, yv, c, 1, tile_rows, n_tiles, n_cores)


def _bce_dense(x, y, bce_target):
    if x.ndim == 2:
        x2 = x
    elif x.ndim > 2:
        x2 = x.reshape(-1, x.shape[-1])    # metadata-only collapse of leading dims
    else:
        x2 = x.reshape(1, -1)
    y2 = y.reshape(x2.shape)
    n, c = x2.shape
    q = _sublane_quantum(x2.dtype, y2.dtype)
    bytes_per_row = c * max(x2.dtype.itemsize, y2.dtype.itemsize)
    tile_rows, n_tiles, n_cores = _row_tiling(n, bytes_per_row, q)
    kernel = functools.partial(
        _bce_dense_kernel, n_rows=n, tile_rows=tile_rows, threshold=bce_target,
        inv_count=1.0 / float(x2.size), ragged=(n % tile_rows != 0))
    return _launch(kernel, x2, y2, c, c, tile_rows, n_tiles, n_cores)


def binary_cross_entropy(x, y, label_smoothing=0.1, bce_target=None):
    """JAX/Pallas equivalent of BinaryCrossEntropy.forward. Returns scalar float32."""
    if x.shape != y.shape:
        return _bce_index(x, y, label_smoothing, bce_target)
    return _bce_dense(x, y, bce_target)


# --------------------------------------------------------------------------------------
# Pure-JAX reference for sanity checking.
# --------------------------------------------------------------------------------------
def _reference(x, y, label_smoothing=0.1, bce_target=None):
    x = x.astype(jnp.float32)
    if x.shape != y.shape:
        c = x.shape[-1]
        smooth = label_smoothing / c
        on_val = 1.0 - label_smoothing + smooth
        t = jnp.full_like(x, smooth)
        t = t.at[jnp.arange(x.shape[0]), y.astype(jnp.int32)].set(on_val)
    else:
        t = y.astype(jnp.float32)
    if bce_target is not None:
        t = (t > bce_target).astype(jnp.float32)
    loss = jnp.maximum(x, 0.0) - x * t + jnp.log1p(jnp.exp(-jnp.abs(x)))
    return jnp.mean(loss)


if __name__ == "__main__":
    key = jax.random.PRNGKey(0)
    kx, ky, kd, kx2, ky2, kd2, kx3, ky3, kx4, ky4 = jax.random.split(key, 10)

    # Small shapes consistent with the module: batch=8, classes=32.
    N, C = 8, 32
    x = jax.random.normal(kx, (N, C), dtype=jnp.float32)
    y_idx = jax.random.randint(ky, (N,), 0, C, dtype=jnp.int32)
    y_dense = jax.random.uniform(kd, (N, C), dtype=jnp.float32)

    # 1) index labels (x.shape != y.shape) -> smoothed one-hot targets.
    out1 = jax.block_until_ready(binary_cross_entropy(x, y_idx, label_smoothing=0.1))
    ref1 = _reference(x, y_idx, label_smoothing=0.1)
    assert jnp.allclose(out1, ref1, atol=1e-5, rtol=1e-4), (out1, ref1)

    # 2) dense targets (x.shape == y.shape).
    out2 = jax.block_until_ready(binary_cross_entropy(x, y_dense, label_smoothing=0.1))
    ref2 = _reference(x, y_dense, label_smoothing=0.1)
    assert jnp.allclose(out2, ref2, atol=1e-5, rtol=1e-4), (out2, ref2)

    # 3) dense targets with bce_target thresholding (cutmix use-case).
    out3 = jax.block_until_ready(binary_cross_entropy(x, y_dense, bce_target=0.5))
    ref3 = _reference(x, y_dense, bce_target=0.5)
    assert jnp.allclose(out3, ref3, atol=1e-5, rtol=1e-4), (out3, ref3)

    # 4) index path with a ragged row tile (N not a multiple of the tile, no C padding).
    xb = jax.random.normal(kx2, (300, 40), dtype=jnp.float32)
    yb = jax.random.randint(ky2, (300,), 0, 40, dtype=jnp.int32)
    out4 = jax.block_until_ready(binary_cross_entropy(xb, yb, label_smoothing=0.1))
    ref4 = _reference(xb, yb, label_smoothing=0.1)
    assert jnp.allclose(out4, ref4, atol=1e-5, rtol=1e-4), (out4, ref4)

    # 5) dense bf16 targets (native-dtype DMA, f32 accumulation in-kernel, ragged tail).
    xc = jax.random.normal(kd2, (40, 1000), dtype=jnp.bfloat16)
    yc = jax.random.uniform(ky2, (40, 1000), dtype=jnp.bfloat16)
    out5 = jax.block_until_ready(binary_cross_entropy(xc, yc))
    ref5 = _reference(xc.astype(jnp.float32), yc.astype(jnp.float32))
    assert jnp.allclose(out5, ref5, atol=1e-3, rtol=1e-3), (out5, ref5)

    # 6) dense multi-tile + dual-core split + ragged tail: (2000, 512) -> 2 tiles of 1024 rows.
    xd = jax.random.normal(kx3, (2000, 512), dtype=jnp.float32)
    yd = jax.random.uniform(ky3, (2000, 512), dtype=jnp.float32)
    out6 = jax.block_until_ready(binary_cross_entropy(xd, yd))
    ref6 = _reference(xd, yd)
    assert jnp.allclose(out6, ref6, atol=1e-4, rtol=1e-4), (out6, ref6)

    # 7) index multi-tile + dual-core split: (2048, 100) -> 2 tiles of 1024 rows.
    xe = jax.random.normal(kx4, (2048, 100), dtype=jnp.float32)
    ye = jax.random.randint(ky4, (2048,), 0, 100, dtype=jnp.int32)
    out7 = jax.block_until_ready(binary_cross_entropy(xe, ye, label_smoothing=0.1))
    ref7 = _reference(xe, ye, label_smoothing=0.1)
    assert jnp.allclose(out7, ref7, atol=1e-4, rtol=1e-4), (out7, ref7)

    print("KERNEL_OK")
</pallas_src>

<mosaic_0001>
module attributes {stable_mosaic.version = 11 : i64} {
  func.func @_bce_index_kernel(%arg0: i32, %arg1: i32, %arg2: memref<8x32xf32, #tpu.memory_space<vmem>>, %arg3: memref<8x1xi32, #tpu.memory_space<vmem>>, %arg4: memref<1x1xf32, #tpu.memory_space<vmem>>, %arg5: memref<8x32xf32, #tpu.memory_space<vmem>>) attributes {dimension_semantics = [#tpu.dimension_semantics<parallel>, #tpu.dimension_semantics<arbitrary>], iteration_bounds = array<i64: 1, 1>, scalar_prefetch = 0 : i64, scratch_operands = 1 : i64, tpu.core_type = #tpu.core_type<tc>, window_params = [{transform_indices = @transform_0, window_bounds = array<i64: 8, 32>}, {transform_indices = @transform_1, window_bounds = array<i64: 8, 1>}, {transform_indices = @transform_2, window_bounds = array<i64: 1, 1>}]} {
    %c0_i32 = arith.constant 0 : i32
    %0 = arith.cmpi eq, %arg1, %c0_i32 : i32
    %1 = arith.extui %0 : i1 to i32
    %c0_i32_0 = arith.constant 0 : i32
    %2 = arith.cmpi ne, %1, %c0_i32_0 : i32
    scf.if %2 {
      %cst_13 = arith.constant 0.000000e+00 : f32
      %27 = vector.broadcast %cst_13 : f32 to vector<8x32xf32>
      %c0_14 = arith.constant 0 : index
      %c0_15 = arith.constant 0 : index
      %28 = vector.load %arg5[%c0_14, %c0_15] : memref<8x32xf32, #tpu.memory_space<vmem>>, vector<8x32xf32>
      tpu.vector_store %arg5[%c0_14, %c0_15], %27 {strides = array<i32>} : memref<8x32xf32, #tpu.memory_space<vmem>>, vector<8x32xf32>,
    } else {
    }
    %c0 = arith.constant 0 : index
    %c0_1 = arith.constant 0 : index
    %3 = vector.load %arg2[%c0, %c0_1] : memref<8x32xf32, #tpu.memory_space<vmem>>, vector<8x32xf32>
    %c0_2 = arith.constant 0 : index
    %c0_3 = arith.constant 0 : index
    %4 = vector.load %arg3[%c0_2, %c0_3] : memref<8x1xi32, #tpu.memory_space<vmem>>, vector<8x1xi32>
    %5 = tpu.iota {dimensions = array<i32: 1>} : vector<8x32xi32>
    %6 = vector.broadcast %4 : vector<8x1xi32> to vector<8x32xi32>
    %7 = arith.cmpi eq, %5, %6 : vector<8x32xi32>
    %cst = arith.constant 0.903124988 : f32
    %cst_4 = arith.constant 3.125000e-03 : f32
    %8 = vector.broadcast %cst : f32 to vector<8x32xf32>
    %9 = vector.broadcast %cst_4 : f32 to vector<8x32xf32>
    %10 = arith.select %7, %8, %9 : vector<8x32xi1>, vector<8x32xf32>
    %cst_5 = arith.constant 0.000000e+00 : f32
    %11 = vector.broadcast %cst_5 : f32 to vector<8x32xf32>
    %12 = arith.maximumf %3, %11 : vector<8x32xf32>
    %13 = arith.mulf %3, %10 : vector<8x32xf32>
    %14 = arith.subf %12, %13 : vector<8x32xf32>
    %15 = math.absf %3 : vector<8x32xf32>
    %cst_6 = arith.constant 0.000000e+00 : f32
    %16 = vector.broadcast %cst_6 : f32 to vector<8x32xf32>
    %17 = arith.subf %16, %15 : vector<8x32xf32>
    %18 = math.exp %17 : vector<8x32xf32>
    %19 = math.log1p %18 : vector<8x32xf32>
    %20 = arith.addf %14, %19 : vector<8x32xf32>
    %c0_7 = arith.constant 0 : index
    %c0_8 = arith.constant 0 : index
    %21 = vector.load %arg5[%c0_7, %c0_8] : memref<8x32xf32, #tpu.memory_space<vmem>>, vector<8x32xf32>
    %22 = arith.addf %21, %20 : vector<8x32xf32>
    %c0_9 = arith.constant 0 : index
    %c0_10 = arith.constant 0 : index
    %23 = vector.load %arg5[%c0_9, %c0_10] : memref<8x32xf32, #tpu.memory_space<vmem>>, vector<8x32xf32>
    tpu.vector_store %arg5[%c0_9, %c0_10], %22 {strides = array<i32>} : memref<8x32xf32, #tpu.memory_space<vmem>>, vector<8x32xf32>,
    %c0_i32_11 = arith.constant 0 : i32
    %24 = arith.cmpi eq, %arg1, %c0_i32_11 : i32
    %25 = arith.extui %24 : i1 to i32
    %c0_i32_12 = arith.constant 0 : i32
    %26 = arith.cmpi ne, %25, %c0_i32_12 : i32
    scf.if %26 {
      %c0_13 = arith.constant 0 : index
      %c0_14 = arith.constant 0 : index
      %27 = vector.load %arg5[%c0_13, %c0_14] : memref<8x32xf32, #tpu.memory_space<vmem>>, vector<8x32xf32>
      %28 = vector.shape_cast %27 : vector<8x32xf32> to vector<1x8x32xf32>
      %cst_15 = arith.constant dense<0.000000e+00> : vector<1xf32>
      %29 = vector.multi_reduction <add>, %28, %cst_15 [1, 2] : vector<1x8x32xf32> to vector<1xf32>
      %30 = vector.shape_cast %29 : vector<1xf32> to vector<1x1x1xf32>
      %31 = vector.extract %30[0, 0, 0] : f32 from vector<1x1x1xf32>
      %cst_16 = arith.constant 3.906250e-03 : f32
      %32 = arith.mulf %31, %cst_16 : f32
      %33 = vector.broadcast %32 : f32 to vector<1x1xf32>
      %c0_17 = arith.constant 0 : index
      %c0_18 = arith.constant 0 : index
      %34 = vector.load %arg4[%c0_17, %c0_18] : memref<1x1xf32, #tpu.memory_space<vmem>>, vector<1x1xf32>
      tpu.vector_store %arg4[%c0_17, %c0_18], %33 {strides = array<i32>} : memref<1x1xf32, #tpu.memory_space<vmem>>, vector<1x1xf32>,
    } else {
    }
    return
  }
  func.func @transform_0(%arg0: i32, %arg1: i32) -> (i32, i32) {
    %c1_i32 = arith.constant 1 : i32
    %0 = arith.muli %arg0, %c1_i32 : i32
    %1 = arith.addi %0, %arg1 : i32
    %c0_i32 = arith.constant 0 : i32
    %c0_i32_0 = arith.constant 0 : i32
    return %1, %c0_i32 : i32, i32
  }
  func.func @transform_1(%arg0: i32, %arg1: i32) -> (i32, i32) {
    %c1_i32 = arith.constant 1 : i32
    %0 = arith.muli %arg0, %c1_i32 : i32
    %1 = arith.addi %0, %arg1 : i32
    %c0_i32 = arith.constant 0 : i32
    %c0_i32_0 = arith.constant 0 : i32
    return %1, %c0_i32 : i32, i32
  }
  func.func @transform_2(%arg0: i32, %arg1: i32) -> (i32, i32) {
    %c0_i32 = arith.constant 0 : i32
    %c0_i32_0 = arith.constant 0 : i32
    return %arg0, %c0_i32 : i32, i32
  }
}

</mosaic_0001>

<bundles_post_ra>
// kernel: tpu_custom_call.1
= control target key start
LH: loop header
LB: loop body
LE: loop exit
PB: predicated region body
PF: predicated region fallthrough
CT: control target
= control target key end

     0   :  { %v161_v1 = vmov 0   ;;  %vm50_vm0 = vcmask 261120   ;;  %s201_s0 = inlined_call_operand.vmem [shape: f32[8,32], index: 0, kind: input, shape index: {}]   ;;  %s202_s1 = inlined_call_operand.vmem [shape: s32[8,1], index: 1, kind: input, shape index: {}]   ;;  %s203_s2 = inlined_call_operand.hbm [shape: f32[1,1], index: 2, kind: output, shape index: {}]  }
   0x1   :  { %v53_v0 = vld [vmem:[%s202_s1] sm:$0xff]  ;;  %132 = vset.pattern.permute.xlu0 %v161_v1 }
   0x2   :  { %7 = vsyncpa [#allocation4], 0  ;;  %57 = vperm.xlu0 %132, %v53_v0   ;;  %v162_v2 = vmov 0.0   ;;  %v52_v3 = vld [vmem:[%s201_s0] sm:$0xff]  ;;  %v54_v10 = vlaneseq  ;;  %v163_v19 = vmov 0.003125  }
   0x3   :  { %51 = vst.msk [vmem:[#allocation2] sm:$0xff] %vm50_vm0, %v162_v2  ;;  %v64_v4 = vand.u32 2147483647, %v52_v3  ;;  %v61_v18 = vmax.f32 %v52_v3, 0.0  ;;  %s164_s0 = smov [#allocation3]   ;;  %vm98_vm3 = vcmask 0  }
   0x4   :  { %v55_v13 = vand.u32 127, %v54_v10  ;;  %s106_s1 = sshll.u32 %s164_s0, 4  ;;  %s107_s1 = int_to_ptr.vmem [resolvable:$true] %s106_s1 }
   0x5   :  { %v65_v5 = vsub.f32 0.0, %v64_v4  ;;  %s137_s15 = scalar_lea.vmem %s107_s1, 16  ;;  %s141_s16 = scalar_lea.vmem %s107_s1, 32 }
   0x6   :  { %p138_p0 = scmp.ne.s32.totalorder %s107_s1, %s137_s15  ;;  %p142_p1 = scmp.lt.s32.totalorder %s107_s1, %s107_s1 }
   0x7   :  { %v66_v6 = vmul.f32 1.442695, %v65_v5  ;;  %p143_p2 = scmp.lt.s32.totalorder %s141_s16, %s137_s15 }
   0x9   :  { %133 = vpow2.f32 %v66_v6  ;;  %p144_p3 = por %p143_p2, %p142_p1 }
   0xa   :  { %v78_v24 = vld [vmem:[#allocation2] sm:$0xff] }
   0xb   :  { %p145_p4 = pnand %p144_p3, %p138_p0 }
  0x13   :  { %v134_v7 = vpop.eup %133 }
  0x14   :  { %v68_v8 = vadd.f32 1.0, %v134_v7  ;;  %v71_v9 = vmul.f32 -0.5, %v134_v7  ;;  %v74_v14 = vand.u32 2147483647, %v134_v7 }
  0x16   :  { %135 = vlog2.f32 %v68_v8  ;;  %v72_v11 = vadd.f32 1.0, %v71_v9  ;;  %vm75_vm2 = vcmp.lt.f32.partialorder %v74_v14, 0.0004427343 }
  0x18   :  { %v73_v17 = vmul.f32 %v134_v7, %v72_v11 }
  0x20   :  { %v136_v12 = vpop.eup %135 }
  0x21   :  { %v70_v16 = vmul.f32 0.6931472, %v136_v12 }
  0x23   :  { %v76_v22 = vsel %vm75_vm2, %v73_v17, %v70_v16 }
  0x81   :  { %v58_v15 = vpop.permute.xlu0 %57 }
  0x82   :  { %vm59_vm1 = vcmp.eq.s32.totalorder %v55_v13, %v58_v15 }
  0x83   :  { %v60_v20 = vsel %vm59_vm1, 0.903125, %v163_v19 }
  0x84   :  { %v62_v21 = vmul.f32 %v60_v20, %v52_v3 }
  0x86   :  { %v63_v23 = vsub.f32 %v61_v18, %v62_v21 }
  0x88   :  { %v77_v25 = vadd.f32 %v76_v22, %v63_v23 }
  0x8a   :  { %v79_v26 = vadd.f32 %v78_v24, %v77_v25 }
  0x8c   :  { %81 = vst.msk [vmem:[#allocation2] sm:$0xff] %vm50_vm0, %v79_v26 }
  0x93   :  { %v85_v27 = vld [vmem:[#allocation2] sm:$0xff] }
  0x94   :  { %v86_v28 = vsel %vm50_vm0, %v85_v27, 0.0 }
  0x95   :  { %87 = vadd.xlane.f32.xlu0 %v86_v28 }
 0x122   :  { %v88_v29 = vpop.xlane.xlu0 %87 }
 0x123   :  { %v89_v30 = vrot.slane %v88_v29, 4 }
 0x125   :  { %v90_v31 = vadd.f32 %v89_v30, %v88_v29 }
 0x127   :  { %v91_v32 = vrot.slane %v90_v31, 2 }
 0x129   :  { %v92_v33 = vadd.f32 %v91_v32, %v90_v31 }
 0x12b   :  { %v93_v34 = vrot.slane %v92_v33, 1 }
 0x12d   :  { %v94_v35 = vadd.f32 %v93_v34, %v92_v33 }
 0x12f   :  { %126 = vpush %v94_v35 }
 0x160   :  { %s127_s13 = spop %126 }
 0x161   :  { %s96_s14 = smul.f32 0.00390625, %s127_s13 }
 0x163   :  { %v97_v36 = vstv %s96_s14 }
 0x164   :  { %99 = vst.msk [vmem:[#allocation3] sm:$0x1] %vm98_vm3, %v97_v36 }
 0x165   :  { %148 = shalt.err (!%p145_p4)
}
 0x166   :  { %s149_s19 = scalar_lea.hbm %s203_s2, 16 }
 0x167   :  { %p150_p5 = scmp.ne.s32.totalorder %s203_s2, %s149_s19  ;;  %p153_p6 = scmp.lt.u32.totalorder %s149_s19, %s203_s2 }
 0x169   :  { %p155_p7 = pnand %p153_p6, %p150_p5 }
 0x16b   :  { %158 = shalt.err (!%p155_p7)
}
 0x16c   :  { %109 = dma.vmem_to_hbm [thread:$0]  %s107_s1, 16, %s203_s2, [#allocation4]  }
 0x16d   :  { %159 = dma.done.wait [#allocation4], 16  }
 0x16e   :  { %160 = vsyncadd [#allocation4], 4294967280 }
 0x16f   :  { %113 = vsyncpa [#allocation4], 1 }

</bundles_post_ra>
